<compile_context>
chip_gen: v7x
topology: tpu7x:2x2x1
jax: 0.10.0
libtpu: 0.0.40
codegen_flags: <defaults>
</compile_context>

<pallas_src>
import functools

import jax
import jax.numpy as jnp
from jax.experimental import pallas as pl
from jax.experimental.pallas import tpu as pltpu


# ----------------------------------------------------------------------------
# Small helpers
# ----------------------------------------------------------------------------
def _round_up(x, m):
    return ((x + m - 1) // m) * m


def _pick_lane_tile(hw, cap=2048):
    """Largest lane tile dividing hw, multiple of 128, <= cap.

    Keeps >=2 grid steps when hw is large (both v7x TensorCores busy) and
    falls back to the full extent (always legal) for small hw.
    """
    if hw <= 256:
        return hw
    t = min(cap, hw // 2 if hw >= 512 else hw)
    t = (t // 128) * 128
    while t >= 128:
        if hw % t == 0:
            return t
        t -= 128
    return hw


# ----------------------------------------------------------------------------
# Pallas kernel: fused 1x1 conv (matmul) + bias + optional activation.
#   x: (B, Cin, HW) bf16,  w: (Cout, Cin) bf16,  b: (Cout, 1) f32
#   grid = (B, HW // tn); every output block is lane-dense (last dim = tn).
# ----------------------------------------------------------------------------
def _conv1x1_kernel(x_ref, w_ref, b_ref, o_ref, *, act):
    y = jnp.dot(w_ref[...], x_ref[0], preferred_element_type=jnp.float32)
    y = y + b_ref[...]
    if act == "leaky_relu":
        y = jnp.where(y >= 0, y, 0.01 * y)
    elif act == "sigmoid":
        y = jax.nn.sigmoid(y)
    elif act == "head4":
        # rows: 0=pos, 1=cos, 2=sin, 3=width ; sigmoid only on pos & width.
        row = jax.lax.broadcasted_iota(jnp.int32, y.shape, 0)
        y = jnp.where((row == 0) | (row == 3), jax.nn.sigmoid(y), y)
    o_ref[0] = y.astype(o_ref.dtype)


def conv1x1_cf(x, w, b, act=None, out_dtype=jnp.bfloat16):
    """1x1 conv, channels-first flattened.  x:(B,Cin,HW) -> (B,Cout,HW)."""
    B, Cin, HW = x.shape
    Cout = w.shape[0]
    Cp = _round_up(Cout, 8)              # keep stores on full sublane groups
    if Cp != Cout:
        w = jnp.pad(w, ((0, Cp - Cout), (0, 0)))
        b = jnp.pad(b, ((0, Cp - Cout),))
    tn = _pick_lane_tile(HW)
    xb = x.astype(jnp.bfloat16)
    wb = w.astype(jnp.bfloat16)
    b2 = b.reshape(Cp, 1).astype(jnp.float32)

    out = pl.pallas_call(
        functools.partial(_conv1x1_kernel, act=act),
        out_shape=jax.ShapeDtypeStruct((B, Cp, HW), out_dtype),
        grid_spec=pltpu.PrefetchScalarGridSpec(
            num_scalar_prefetch=0,
            grid=(B, HW // tn),
            in_specs=[
                pl.BlockSpec((1, Cin, tn), lambda bi, ti: (bi, 0, ti)),
                pl.BlockSpec((Cp, Cin), lambda bi, ti: (0, 0)),
                pl.BlockSpec((Cp, 1), lambda bi, ti: (0, 0)),
            ],
            out_specs=pl.BlockSpec((1, Cp, tn), lambda bi, ti: (bi, 0, ti)),
        ),
        compiler_params=pltpu.CompilerParams(
            dimension_semantics=("parallel", "parallel")),
    )(xb, wb, b2)
    if Cp != Cout:
        out = out[:, :Cout]
    return out


# ----------------------------------------------------------------------------
# Pallas kernel: fused 3x3 conv (+bias) + InstanceNorm(affine) + LeakyReLU.
#   x : (B, Cin, H*W) bf16 (flattened image), one batch element per grid step.
#   w9: (9, Cout, Cin) bf16  -- taps ordered (dh, dw) row-major.
#   The 9 taps are built in-VMEM from a zero-haloed flattened image (static
#   lane-offset slices + a column-validity mask), so no im2col tensor ever
#   touches HBM.  InstanceNorm statistics reduce over the lane axis (H*W),
#   i.e. per (batch, channel) row, in f32.
# ----------------------------------------------------------------------------
def _conv3x3_in_lrelu_kernel(x_ref, w_ref, b_ref, g_ref, be_ref, o_ref,
                             *, H, W, eps, slope):
    HW = H * W
    cin = x_ref.shape[1]
    cout = o_ref.shape[1]
    x = x_ref[0]                                        # (Cin, HW) bf16

    # zero halo, lane-aligned so the concat below is aligned.
    halo = _round_up(W + 1, 128)
    zpad = jnp.zeros((cin, halo), x.dtype)
    xz = jnp.concatenate([zpad, x, zpad], axis=1)       # (Cin, HW + 2*halo)

    # per-column validity (handles the horizontal wrap across image rows)
    col = jax.lax.broadcasted_iota(jnp.int32, (1, HW), 1)
    if (W & (W - 1)) == 0:
        wcol = jnp.bitwise_and(col, W - 1)
    else:
        wcol = jax.lax.rem(col, W)
    ok_l = jnp.broadcast_to(wcol >= 1, (cin, HW))       # needs w-1 >= 0
    ok_r = jnp.broadcast_to(wcol <= W - 2, (cin, HW))   # needs w+1 <  W
    zeros = jnp.zeros((cin, HW), x.dtype)

    acc = jnp.zeros((cout, HW), jnp.float32)
    t = 0
    for dy in (-1, 0, 1):
        for dx in (-1, 0, 1):
            s = dy * W + dx
            xt = xz[:, halo + s:halo + s + HW]          # tap[i] = x[i + s]
            if dx == -1:
                xt = jnp.where(ok_l, xt, zeros)
            elif dx == 1:
                xt = jnp.where(ok_r, xt, zeros)
            acc = acc + jnp.dot(w_ref[t], xt,
                                preferred_element_type=jnp.float32)
            t += 1

    y = acc + b_ref[...]
    mean = jnp.mean(y, axis=1, keepdims=True)
    var = jnp.mean(jnp.square(y - mean), axis=1, keepdims=True)
    y = (y - mean) * jax.lax.rsqrt(var + eps)
    y = y * g_ref[...] + be_ref[...]
    y = jnp.where(y >= 0, y, slope * y)                 # LeakyReLU(0.01)
    o_ref[0] = y.astype(o_ref.dtype)


def conv3x3_in_lrelu_cf(x, H, W, w9, b, gamma, beta,
                        out_dtype=jnp.bfloat16, eps=1e-5, slope=0.01):
    B, Cin, HW = x.shape
    assert HW == H * W
    Cout = w9.shape[1]
    xb = x.astype(jnp.bfloat16)
    wb = w9.astype(jnp.bfloat16)
    b2 = b.reshape(Cout, 1).astype(jnp.float32)
    g2 = gamma.reshape(Cout, 1).astype(jnp.float32)
    be2 = beta.reshape(Cout, 1).astype(jnp.float32)
    return pl.pallas_call(
        functools.partial(_conv3x3_in_lrelu_kernel, H=H, W=W, eps=eps,
                          slope=slope),
        out_shape=jax.ShapeDtypeStruct((B, Cout, HW), out_dtype),
        grid_spec=pltpu.PrefetchScalarGridSpec(
            num_scalar_prefetch=0,
            grid=(B,),
            in_specs=[
                pl.BlockSpec((1, Cin, HW), lambda bi: (bi, 0, 0)),
                pl.BlockSpec((9, Cout, Cin), lambda bi: (0, 0, 0)),
                pl.BlockSpec((Cout, 1), lambda bi: (0, 0)),
                pl.BlockSpec((Cout, 1), lambda bi: (0, 0)),
                pl.BlockSpec((Cout, 1), lambda bi: (0, 0)),
            ],
            out_specs=pl.BlockSpec((1, Cout, HW), lambda bi: (bi, 0, 0)),
        ),
        compiler_params=pltpu.CompilerParams(
            dimension_semantics=("parallel",)),
    )(xb, wb, b2, g2, be2)


# ----------------------------------------------------------------------------
# Bilinear interpolation (align_corners=True) -- plain-JAX layout glue.
# ----------------------------------------------------------------------------
def _interp_matrix(out_n, in_n):
    if out_n > 1:
        src = jnp.arange(out_n, dtype=jnp.float32) * ((in_n - 1) / (out_n - 1))
    else:
        src = jnp.zeros((out_n,), jnp.float32)
    lo = jnp.clip(jnp.floor(src).astype(jnp.int32), 0, in_n - 1)
    hi = jnp.clip(lo + 1, 0, in_n - 1)
    frac = src - lo.astype(jnp.float32)
    return (jax.nn.one_hot(lo, in_n, dtype=jnp.float32) * (1.0 - frac)[:, None]
            + jax.nn.one_hot(hi, in_n, dtype=jnp.float32) * frac[:, None])


def bilinear_resize_cf(x, H, W, out_h, out_w, out_dtype=jnp.bfloat16):
    """x: (B, C, H*W) -> (B, C, out_h*out_w), bilinear, align_corners=True."""
    B, C, _ = x.shape
    xi = x.astype(jnp.float32).reshape(B, C, H, W)
    Ah = _interp_matrix(out_h, H)
    Aw = _interp_matrix(out_w, W)
    y = jnp.einsum("ph,bchw->bcpw", Ah, xi)
    y = jnp.einsum("qw,bcpw->bcpq", Aw, y)
    return y.reshape(B, C, out_h * out_w).astype(out_dtype)


# ----------------------------------------------------------------------------
# Parameters (PyTorch init semantics: kaiming_normal_(a=1), zero bias).
# ----------------------------------------------------------------------------
def _conv1x1_params(key, cin, cout):
    std = (1.0 / cin) ** 0.5
    return (jax.random.normal(key, (cout, cin), jnp.float32) * std,
            jnp.zeros((cout,), jnp.float32))


def _conv3x3_params(key, cin, cout):
    std = (1.0 / (9 * cin)) ** 0.5
    return (jax.random.normal(key, (9, cout, cin), jnp.float32) * std,
            jnp.zeros((cout,), jnp.float32))


def _norm_params(c):
    return jnp.ones((c,), jnp.float32), jnp.zeros((c,), jnp.float32)


def make_params(key, feats_dims, word_dim, seg_dim, grasp_dim):
    del word_dim  # FGOP stand-in does not use word features (see TODO below)
    hidden = 2 * seg_dim            # neck hidden_dim
    keys = iter(jax.random.split(key, 32))
    c4, c3, c2, c1 = feats_dims
    p = {}
    p["neck"] = {
        "fgop0": _conv1x1_params(next(keys), c4, hidden),
        "fgop1": _conv1x1_params(next(keys), hidden + c3, hidden),
        "fgop2": _conv1x1_params(next(keys), hidden + c2, hidden),
        "fgop3": _conv1x1_params(next(keys), hidden + c1, hidden),
    }
    sin_dim, shid = 2 * seg_dim, seg_dim
    p["seg"] = {
        "conv1x1": _conv1x1_params(next(keys), 4 * sin_dim, 2 * shid),
        "fgop": _conv1x1_params(next(keys), 2 * shid, 2 * shid),
        "conv3x3": _conv3x3_params(next(keys), 2 * shid, shid),
        "In": _norm_params(shid),
        "seg_head": _conv1x1_params(next(keys), shid, 1),
    }
    gin, ghid = 2 * seg_dim, grasp_dim
    p["grasp"] = {
        "conv1x1": _conv1x1_params(next(keys), 4 * gin, 2 * ghid),
        "conv3x3": _conv3x3_params(next(keys), 2 * ghid, ghid),
        "bn": _norm_params(ghid),                       # nn.InstanceNorm2d
        "conv1x1_2": _conv1x1_params(next(keys), ghid + seg_dim + 1, ghid),
        "conv3x3_2": _conv3x3_params(next(keys), ghid, ghid // 2),
        "bn_2": _norm_params(ghid // 2),
        # pos / cos / sin / width 1x1 heads stacked into one (4, C) matmul
        "heads": _conv1x1_params(next(keys), ghid // 2, 4),
    }
    return p


# ----------------------------------------------------------------------------
# Module forwards (channels-first flattened internally).
# ----------------------------------------------------------------------------
def fgop_forward(x, word, w, b, mask=None):
    # TODO(synk): FGOP's definition is not provided in the reference source; it
    # is approximated here as a 1x1 conv projection (word / mask are unused).
    del word, mask
    return conv1x1_cf(x, w, b)


def neck_forward(p, feats, word, mask=None):
    (x4, h4, w4), (x3, h3, w3), (x2, h2, w2), (x1, h1, w1) = feats
    out = []
    x = fgop_forward(x4, word, *p["fgop0"], mask=mask)
    out.append((x, h4, w4))
    if h4 < h3 or w4 < w3:
        x = bilinear_resize_cf(x, h4, w4, h3, w3)
    x = jnp.concatenate([x, x3], axis=1)
    x = fgop_forward(x, word, *p["fgop1"], mask=mask)
    out.append((x, h3, w3))
    if h3 < h2 or w3 < w2:
        x = bilinear_resize_cf(x, h3, w3, h2, w2)
    x = jnp.concatenate([x, x2], axis=1)
    x = fgop_forward(x, word, *p["fgop2"], mask=mask)
    out.append((x, h2, w2))
    if h2 < h1 or w2 < w1:
        x = bilinear_resize_cf(x, h2, w2, h1, w1)
    x = jnp.concatenate([x, x1], axis=1)
    x = fgop_forward(x, word, *p["fgop3"], mask=mask)
    out.append((x, h1, w1))
    return out


def segmentation_forward(p, cat_sf, word, s, img_size):
    seg_f = conv1x1_cf(cat_sf, *p["conv1x1"])
    seg_f = fgop_forward(seg_f, word, *p["fgop"])
    # 3x3 conv + InstanceNorm(affine) + LeakyReLU fused in one Pallas kernel
    fs = conv3x3_in_lrelu_cf(seg_f, s, s, *p["conv3x3"], *p["In"])
    # dropout p=0.1 -> identity at inference
    mask_q = conv1x1_cf(fs, *p["seg_head"], out_dtype=jnp.float32)  # (B,1,s*s)
    seg_feats = jnp.concatenate([fs, mask_q.astype(fs.dtype)], axis=1)
    seg_mask = bilinear_resize_cf(mask_q, s, s, img_size, img_size,
                                  out_dtype=jnp.float32)
    return seg_mask, seg_feats


def grasp_forward(p, cat_sf, seg_feats, s, img_size):
    g = conv1x1_cf(cat_sf, *p["conv1x1"])
    g = conv3x3_in_lrelu_cf(g, s, s, *p["conv3x3"], *p["bn"])
    # dropout -> identity
    g = conv1x1_cf(jnp.concatenate([g, seg_feats], axis=1), *p["conv1x1_2"])
    g = bilinear_resize_cf(g, s, s, img_size, img_size)
    g = conv3x3_in_lrelu_cf(g, img_size, img_size, *p["conv3x3_2"], *p["bn_2"])
    # dropout -> identity
    heads = conv1x1_cf(g, *p["heads"], act="head4",
                       out_dtype=jnp.float32)            # (B, 4, img*img)
    return heads[:, 0:1], heads[:, 1:2], heads[:, 2:3], heads[:, 3:4]


def dual_decoder_forward(params, features_nchw, word, img_size, mask=None):
    # NCHW (PyTorch) -> channels-first flattened (B, C, H*W): pure reshape.
    feats = []
    for f in features_nchw:
        B, C, H, W = f.shape
        feats.append((f.reshape(B, C, H * W).astype(jnp.bfloat16), H, W))
    neck_feats = neck_forward(params["neck"], feats, word, mask)

    # hoisted: both branches consume the same resized + concatenated features
    s = img_size // 4
    sf = [bilinear_resize_cf(x, h, w, s, s) for (x, h, w) in neck_feats]
    cat_sf = jnp.concatenate(sf, axis=1)                 # (B, 4*hidden, s*s)

    seg_mask, seg_feats = segmentation_forward(params["seg"], cat_sf, word,
                                               s, img_size)
    pos, cos, sin, width = grasp_forward(params["grasp"], cat_sf, seg_feats,
                                         s, img_size)

    B = features_nchw[0].shape[0]
    to_img = lambda t: t.reshape(B, 1, img_size, img_size).astype(jnp.float32)
    return tuple(to_img(t) for t in (seg_mask, pos, cos, sin, width))


# ----------------------------------------------------------------------------
# Pure-JAX references for the focused kernel checks.
# ----------------------------------------------------------------------------
def _conv3x3_in_lrelu_ref(x, H, W, w9, b, gamma, beta, eps=1e-5, slope=0.01):
    B, Cin, HW = x.shape
    Cout = w9.shape[1]
    xi = x.astype(jnp.float32).reshape(B, Cin, H, W)
    xp = jnp.pad(xi, ((0, 0), (0, 0), (1, 1), (1, 1)))
    w = w9.astype(jnp.bfloat16).astype(jnp.float32)
    acc = jnp.zeros((B, Cout, H, W), jnp.float32)
    t = 0
    for dy in range(3):
        for dx in range(3):
            tap = xp[:, :, dy:dy + H, dx:dx + W]
            acc = acc + jnp.einsum("oc,bchw->bohw", w[t], tap,
                                   precision=jax.lax.Precision.HIGHEST)
            t += 1
    y = acc + b.reshape(1, Cout, 1, 1)
    mean = y.mean(axis=(2, 3), keepdims=True)
    var = jnp.mean(jnp.square(y - mean), axis=(2, 3), keepdims=True)
    y = (y - mean) * jax.lax.rsqrt(var + eps)
    y = y * gamma.reshape(1, Cout, 1, 1) + beta.reshape(1, Cout, 1, 1)
    y = jnp.where(y >= 0, y, slope * y)
    return y.reshape(B, Cout, HW)


def _conv1x1_ref(x, w, b):
    return jnp.einsum("oc,bcn->bon",
                      w.astype(jnp.bfloat16).astype(jnp.float32),
                      x.astype(jnp.float32),
                      precision=jax.lax.Precision.HIGHEST) + b.reshape(1, -1, 1)


# ----------------------------------------------------------------------------
# Demo
# ----------------------------------------------------------------------------
if __name__ == "__main__":
    # Small, consistent config: feats_dims, word_dim, seg_dim, grasp_dim, img_size
    FEATS_DIMS = [64, 32, 16, 8]
    WORD_DIM = 16
    SEG_DIM = 8
    GRASP_DIM = 16
    IMG_SIZE = 64
    B = 2

    key = jax.random.PRNGKey(0)
    kp, k4, k3, k2, k1, kw = jax.random.split(key, 6)
    params = make_params(kp, FEATS_DIMS, WORD_DIM, SEG_DIM, GRASP_DIM)

    # Backbone pyramid: [B,C4,H/32,W/32] ... [B,C1,H/4,W/4]
    x_c4 = jax.random.normal(k4, (B, FEATS_DIMS[0], IMG_SIZE // 32, IMG_SIZE // 32), jnp.float32)
    x_c3 = jax.random.normal(k3, (B, FEATS_DIMS[1], IMG_SIZE // 16, IMG_SIZE // 16), jnp.float32)
    x_c2 = jax.random.normal(k2, (B, FEATS_DIMS[2], IMG_SIZE // 8, IMG_SIZE // 8), jnp.float32)
    x_c1 = jax.random.normal(k1, (B, FEATS_DIMS[3], IMG_SIZE // 4, IMG_SIZE // 4), jnp.float32)
    word = jax.random.normal(kw, (B, WORD_DIM, 8), jnp.float32)  # [B, C, N] (unused by FGOP stand-in)

    # --- focused correctness checks of the two Pallas kernels ----------------
    kc = jax.random.split(jax.random.PRNGKey(1), 6)
    # fused 3x3 conv + InstanceNorm + LeakyReLU
    Hc = Wc = 16
    xc = jax.random.normal(kc[0], (B, 16, Hc * Wc), jnp.float32).astype(jnp.bfloat16)
    w9c = jax.random.normal(kc[1], (9, 8, 16), jnp.float32) * 0.1
    bc = 0.1 * jax.random.normal(kc[2], (8,), jnp.float32)
    gc = 1.0 + 0.1 * jax.random.normal(kc[3], (8,), jnp.float32)
    bec = 0.1 * jax.random.normal(kc[4], (8,), jnp.float32)
    got3 = conv3x3_in_lrelu_cf(xc, Hc, Wc, w9c, bc, gc, bec, out_dtype=jnp.float32)
    ref3 = _conv3x3_in_lrelu_ref(xc, Hc, Wc, w9c, bc, gc, bec)
    err3 = float(jnp.max(jnp.abs(got3 - ref3)))
    assert err3 < 2e-2, f"conv3x3+IN+LReLU kernel mismatch (max abs err {err3})"
    # 1x1 conv (exercises the lane-tiled grid and the Cout<8 padding path)
    x1c = jax.random.normal(kc[5], (B, 16, 64 * 64), jnp.float32).astype(jnp.bfloat16)
    w1c, b1c = _conv1x1_params(jax.random.PRNGKey(2), 16, 4)
    b1c = b1c + 0.05
    got1 = conv1x1_cf(x1c, w1c, b1c, out_dtype=jnp.float32)
    ref1 = _conv1x1_ref(x1c, w1c, b1c)
    err1 = float(jnp.max(jnp.abs(got1 - ref1)))
    assert err1 < 2e-2, f"conv1x1 kernel mismatch (max abs err {err1})"

    # --- full forward ---------------------------------------------------------
    fwd = jax.jit(lambda prm, feats, wd: dual_decoder_forward(prm, feats, wd, IMG_SIZE))
    outs = fwd(params, (x_c4, x_c3, x_c2, x_c1), word)
    outs = jax.block_until_ready(outs)

    seg_mask, pos, cos, sin, width = outs
    assert seg_mask.shape == (B, 1, IMG_SIZE, IMG_SIZE)
    assert pos.shape == cos.shape == sin.shape == width.shape == (B, 1, IMG_SIZE, IMG_SIZE)
    for t in outs:
        assert bool(jnp.all(jnp.isfinite(t)))
    assert bool(jnp.all((pos >= 0) & (pos <= 1)))
    assert bool(jnp.all((width >= 0) & (width <= 1)))
    print("KERNEL_OK")
</pallas_src>

<mosaic_0001>
module attributes {stable_mosaic.version = 11 : i64} {
  func.func @_conv3x3_in_lrelu_kernel(%arg0: i32, %arg1: memref<1x16x256xbf16, #tpu.memory_space<vmem>>, %arg2: memref<9x8x16xbf16, #tpu.memory_space<vmem>>, %arg3: memref<8x1xf32, #tpu.memory_space<vmem>>, %arg4: memref<8x1xf32, #tpu.memory_space<vmem>>, %arg5: memref<8x1xf32, #tpu.memory_space<vmem>>, %arg6: memref<1x8x256xf32, #tpu.memory_space<vmem>>) attributes {dimension_semantics = [#tpu.dimension_semantics<parallel>], iteration_bounds = array<i64: 2>, scalar_prefetch = 0 : i64, scratch_operands = 0 : i64, tpu.core_type = #tpu.core_type<tc>, window_params = [{transform_indices = @transform_0, window_bounds = array<i64: 1, 16, 256>}, {pipeline_mode = #tpu.pipeline_mode<synchronous>, transform_indices = @transform_1, window_bounds = array<i64: 9, 8, 16>}, {pipeline_mode = #tpu.pipeline_mode<synchronous>, transform_indices = @transform_2, window_bounds = array<i64: 8, 1>}, {pipeline_mode = #tpu.pipeline_mode<synchronous>, transform_indices = @transform_3, window_bounds = array<i64: 8, 1>}, {pipeline_mode = #tpu.pipeline_mode<synchronous>, transform_indices = @transform_4, window_bounds = array<i64: 8, 1>}, {transform_indices = @transform_5, window_bounds = array<i64: 1, 8, 256>}]} {
    %c0 = arith.constant 0 : index
    %c0_0 = arith.constant 0 : index
    %c0_1 = arith.constant 0 : index
    %0 = vector.load %arg1[%c0, %c0_0, %c0_1] : memref<1x16x256xbf16, #tpu.memory_space<vmem>>, vector<1x16x256xbf16>
    %1 = vector.shape_cast %0 : vector<1x16x256xbf16> to vector<16x256xbf16>
    %cst = arith.constant 0.000000e+00 : bf16
    %2 = vector.broadcast %cst : bf16 to vector<16x128xbf16>
    %3 = tpu.concatenate %2, %1, %2 in 1 : vector<16x128xbf16>, vector<16x256xbf16>, vector<16x128xbf16> -> vector<16x512xbf16>
    %4 = tpu.iota {dimensions = array<i32: 1>} : vector<1x256xi32>
    %c15_i32 = arith.constant 15 : i32
    %5 = vector.broadcast %c15_i32 : i32 to vector<1x256xi32>
    %6 = arith.andi %4, %5 : vector<1x256xi32>
    %c1_i32 = arith.constant 1 : i32
    %7 = vector.broadcast %c1_i32 : i32 to vector<1x256xi32>
    %8 = arith.cmpi sge, %6, %7 : vector<1x256xi32>
    %9 = vector.shape_cast %8 : vector<1x256xi1> to vector<1x256xi1>
    %10 = vector.broadcast %9 : vector<1x256xi1> to vector<16x256xi1>
    %c14_i32 = arith.constant 14 : i32
    %11 = vector.broadcast %c14_i32 : i32 to vector<1x256xi32>
    %12 = arith.cmpi sle, %6, %11 : vector<1x256xi32>
    %13 = vector.shape_cast %12 : vector<1x256xi1> to vector<1x256xi1>
    %14 = vector.broadcast %13 : vector<1x256xi1> to vector<16x256xi1>
    %cst_2 = arith.constant 0.000000e+00 : bf16
    %15 = vector.broadcast %cst_2 : bf16 to vector<16x256xbf16>
    %cst_3 = arith.constant 0.000000e+00 : f32
    %16 = vector.broadcast %cst_3 : f32 to vector<8x256xf32>
    %17 = vector.extract_strided_slice %3 {offsets = [0, 111], sizes = [16, 256], strides = [1, 1]} : vector<16x512xbf16> to vector<16x256xbf16>
    %18 = arith.select %10, %17, %15 : vector<16x256xi1>, vector<16x256xbf16>
    %c0_4 = arith.constant 0 : index
    %c0_5 = arith.constant 0 : index
    %c0_6 = arith.constant 0 : index
    %19 = vector.load %arg2[%c0_4, %c0_5, %c0_6] : memref<9x8x16xbf16, #tpu.memory_space<vmem>>, vector<1x8x16xbf16>
    %20 = vector.shape_cast %19 : vector<1x8x16xbf16> to vector<8x16xbf16>
    %cst_7 = arith.constant dense<0.000000e+00> : vector<8x256xf32>
    %21 = tpu.matmul %20, %18, %cst_7 {dimension_numbers = #tpu.dot_dimension_numbers<[1], [0], [0], [1], [0, 0, 1, 1], [], []>} : vector<8x16xbf16>, vector<16x256xbf16>, vector<8x256xf32> -> vector<8x256xf32>
    %22 = arith.addf %16, %21 : vector<8x256xf32>
    %23 = vector.extract_strided_slice %3 {offsets = [0, 112], sizes = [16, 256], strides = [1, 1]} : vector<16x512xbf16> to vector<16x256xbf16>
    %c1 = arith.constant 1 : index
    %c0_8 = arith.constant 0 : index
    %c0_9 = arith.constant 0 : index
    %24 = vector.load %arg2[%c1, %c0_8, %c0_9] : memref<9x8x16xbf16, #tpu.memory_space<vmem>>, vector<1x8x16xbf16>
    %25 = vector.shape_cast %24 : vector<1x8x16xbf16> to vector<8x16xbf16>
    %cst_10 = arith.constant dense<0.000000e+00> : vector<8x256xf32>
    %26 = tpu.matmul %25, %23, %cst_10 {dimension_numbers = #tpu.dot_dimension_numbers<[1], [0], [0], [1], [0, 0, 1, 1], [], []>} : vector<8x16xbf16>, vector<16x256xbf16>, vector<8x256xf32> -> vector<8x256xf32>
    %27 = arith.addf %22, %26 : vector<8x256xf32>
    %28 = vector.extract_strided_slice %3 {offsets = [0, 113], sizes = [16, 256], strides = [1, 1]} : vector<16x512xbf16> to vector<16x256xbf16>
    %29 = arith.select %14, %28, %15 : vector<16x256xi1>, vector<16x256xbf16>
    %c2 = arith.constant 2 : index
    %c0_11 = arith.constant 0 : index
    %c0_12 = arith.constant 0 : index
    %30 = vector.load %arg2[%c2, %c0_11, %c0_12] : memref<9x8x16xbf16, #tpu.memory_space<vmem>>, vector<1x8x16xbf16>
    %31 = vector.shape_cast %30 : vector<1x8x16xbf16> to vector<8x16xbf16>
    %cst_13 = arith.constant dense<0.000000e+00> : vector<8x256xf32>
    %32 = tpu.matmul %31, %29, %cst_13 {dimension_numbers = #tpu.dot_dimension_numbers<[1], [0], [0], [1], [0, 0, 1, 1], [], []>} : vector<8x16xbf16>, vector<16x256xbf16>, vector<8x256xf32> -> vector<8x256xf32>
    %33 = arith.addf %27, %32 : vector<8x256xf32>
    %34 = vector.extract_strided_slice %3 {offsets = [0, 127], sizes = [16, 256], strides = [1, 1]} : vector<16x512xbf16> to vector<16x256xbf16>
    %35 = arith.select %10, %34, %15 : vector<16x256xi1>, vector<16x256xbf16>
    %c3 = arith.constant 3 : index
    %c0_14 = arith.constant 0 : index
    %c0_15 = arith.constant 0 : index
    %36 = vector.load %arg2[%c3, %c0_14, %c0_15] : memref<9x8x16xbf16, #tpu.memory_space<vmem>>, vector<1x8x16xbf16>
    %37 = vector.shape_cast %36 : vector<1x8x16xbf16> to vector<8x16xbf16>
    %cst_16 = arith.constant dense<0.000000e+00> : vector<8x256xf32>
    %38 = tpu.matmul %37, %35, %cst_16 {dimension_numbers = #tpu.dot_dimension_numbers<[1], [0], [0], [1], [0, 0, 1, 1], [], []>} : vector<8x16xbf16>, vector<16x256xbf16>, vector<8x256xf32> -> vector<8x256xf32>
    %39 = arith.addf %33, %38 : vector<8x256xf32>
    %40 = vector.extract_strided_slice %3 {offsets = [0, 128], sizes = [16, 256], strides = [1, 1]} : vector<16x512xbf16> to vector<16x256xbf16>
    %c4 = arith.constant 4 : index
    %c0_17 = arith.constant 0 : index
    %c0_18 = arith.constant 0 : index
    %41 = vector.load %arg2[%c4, %c0_17, %c0_18] : memref<9x8x16xbf16, #tpu.memory_space<vmem>>, vector<1x8x16xbf16>
    %42 = vector.shape_cast %41 : vector<1x8x16xbf16> to vector<8x16xbf16>
    %cst_19 = arith.constant dense<0.000000e+00> : vector<8x256xf32>
    %43 = tpu.matmul %42, %40, %cst_19 {dimension_numbers = #tpu.dot_dimension_numbers<[1], [0], [0], [1], [0, 0, 1, 1], [], []>} : vector<8x16xbf16>, vector<16x256xbf16>, vector<8x256xf32> -> vector<8x256xf32>
    %44 = arith.addf %39, %43 : vector<8x256xf32>
    %45 = vector.extract_strided_slice %3 {offsets = [0, 129], sizes = [16, 256], strides = [1, 1]} : vector<16x512xbf16> to vector<16x256xbf16>
    %46 = arith.select %14, %45, %15 : vector<16x256xi1>, vector<16x256xbf16>
    %c5 = arith.constant 5 : index
    %c0_20 = arith.constant 0 : index
    %c0_21 = arith.constant 0 : index
    %47 = vector.load %arg2[%c5, %c0_20, %c0_21] : memref<9x8x16xbf16, #tpu.memory_space<vmem>>, vector<1x8x16xbf16>
    %48 = vector.shape_cast %47 : vector<1x8x16xbf16> to vector<8x16xbf16>
    %cst_22 = arith.constant dense<0.000000e+00> : vector<8x256xf32>
    %49 = tpu.matmul %48, %46, %cst_22 {dimension_numbers = #tpu.dot_dimension_numbers<[1], [0], [0], [1], [0, 0, 1, 1], [], []>} : vector<8x16xbf16>, vector<16x256xbf16>, vector<8x256xf32> -> vector<8x256xf32>
    %50 = arith.addf %44, %49 : vector<8x256xf32>
    %51 = vector.extract_strided_slice %3 {offsets = [0, 143], sizes = [16, 256], strides = [1, 1]} : vector<16x512xbf16> to vector<16x256xbf16>
    %52 = arith.select %10, %51, %15 : vector<16x256xi1>, vector<16x256xbf16>
    %c6 = arith.constant 6 : index
    %c0_23 = arith.constant 0 : index
    %c0_24 = arith.constant 0 : index
    %53 = vector.load %arg2[%c6, %c0_23, %c0_24] : memref<9x8x16xbf16, #tpu.memory_space<vmem>>, vector<1x8x16xbf16>
    %54 = vector.shape_cast %53 : vector<1x8x16xbf16> to vector<8x16xbf16>
    %cst_25 = arith.constant dense<0.000000e+00> : vector<8x256xf32>
    %55 = tpu.matmul %54, %52, %cst_25 {dimension_numbers = #tpu.dot_dimension_numbers<[1], [0], [0], [1], [0, 0, 1, 1], [], []>} : vector<8x16xbf16>, vector<16x256xbf16>, vector<8x256xf32> -> vector<8x256xf32>
    %56 = arith.addf %50, %55 : vector<8x256xf32>
    %57 = vector.extract_strided_slice %3 {offsets = [0, 144], sizes = [16, 256], strides = [1, 1]} : vector<16x512xbf16> to vector<16x256xbf16>
    %c7 = arith.constant 7 : index
    %c0_26 = arith.constant 0 : index
    %c0_27 = arith.constant 0 : index
    %58 = vector.load %arg2[%c7, %c0_26, %c0_27] : memref<9x8x16xbf16, #tpu.memory_space<vmem>>, vector<1x8x16xbf16>
    %59 = vector.shape_cast %58 : vector<1x8x16xbf16> to vector<8x16xbf16>
    %cst_28 = arith.constant dense<0.000000e+00> : vector<8x256xf32>
    %60 = tpu.matmul %59, %57, %cst_28 {dimension_numbers = #tpu.dot_dimension_numbers<[1], [0], [0], [1], [0, 0, 1, 1], [], []>} : vector<8x16xbf16>, vector<16x256xbf16>, vector<8x256xf32> -> vector<8x256xf32>
    %61 = arith.addf %56, %60 : vector<8x256xf32>
    %62 = vector.extract_strided_slice %3 {offsets = [0, 145], sizes = [16, 256], strides = [1, 1]} : vector<16x512xbf16> to vector<16x256xbf16>
    %63 = arith.select %14, %62, %15 : vector<16x256xi1>, vector<16x256xbf16>
    %c8 = arith.constant 8 : index
    %c0_29 = arith.constant 0 : index
    %c0_30 = arith.constant 0 : index
    %64 = vector.load %arg2[%c8, %c0_29, %c0_30] : memref<9x8x16xbf16, #tpu.memory_space<vmem>>, vector<1x8x16xbf16>
    %65 = vector.shape_cast %64 : vector<1x8x16xbf16> to vector<8x16xbf16>
    %cst_31 = arith.constant dense<0.000000e+00> : vector<8x256xf32>
    %66 = tpu.matmul %65, %63, %cst_31 {dimension_numbers = #tpu.dot_dimension_numbers<[1], [0], [0], [1], [0, 0, 1, 1], [], []>} : vector<8x16xbf16>, vector<16x256xbf16>, vector<8x256xf32> -> vector<8x256xf32>
    %67 = arith.addf %61, %66 : vector<8x256xf32>
    %c0_32 = arith.constant 0 : index
    %c0_33 = arith.constant 0 : index
    %68 = vector.load %arg3[%c0_32, %c0_33] : memref<8x1xf32, #tpu.memory_space<vmem>>, vector<8x1xf32>
    %69 = vector.broadcast %68 : vector<8x1xf32> to vector<8x256xf32>
    %70 = arith.addf %67, %69 : vector<8x256xf32>
    %cst_34 = arith.constant dense<0.000000e+00> : vector<8xf32>
    %71 = vector.multi_reduction <add>, %70, %cst_34 [1] : vector<8x256xf32> to vector<8xf32>
    %72 = vector.shape_cast %71 : vector<8xf32> to vector<8x1xf32>
    %cst_35 = arith.constant 2.560000e+02 : f32
    %73 = vector.broadcast %cst_35 : f32 to vector<8x1xf32>
    %74 = arith.divf %72, %73 : vector<8x1xf32>
    %75 = vector.broadcast %74 : vector<8x1xf32> to vector<8x256xf32>
    %76 = arith.subf %70, %75 : vector<8x256xf32>
    %77 = arith.mulf %76, %76 : vector<8x256xf32>
    %cst_36 = arith.constant dense<0.000000e+00> : vector<8xf32>
    %78 = vector.multi_reduction <add>, %77, %cst_36 [1] : vector<8x256xf32> to vector<8xf32>
    %79 = vector.shape_cast %78 : vector<8xf32> to vector<8x1xf32>
    %cst_37 = arith.constant 2.560000e+02 : f32
    %80 = vector.broadcast %cst_37 : f32 to vector<8x1xf32>
    %81 = arith.divf %79, %80 : vector<8x1xf32>
    %82 = vector.broadcast %74 : vector<8x1xf32> to vector<8x256xf32>
    %83 = arith.subf %70, %82 : vector<8x256xf32>
    %cst_38 = arith.constant 9.99999974E-6 : f32
    %84 = vector.broadcast %cst_38 : f32 to vector<8x1xf32>
    %85 = arith.addf %81, %84 : vector<8x1xf32>
    %86 = math.rsqrt %85 : vector<8x1xf32>
    %87 = vector.broadcast %86 : vector<8x1xf32> to vector<8x256xf32>
    %88 = arith.mulf %83, %87 : vector<8x256xf32>
    %c0_39 = arith.constant 0 : index
    %c0_40 = arith.constant 0 : index
    %89 = vector.load %arg4[%c0_39, %c0_40] : memref<8x1xf32, #tpu.memory_space<vmem>>, vector<8x1xf32>
    %90 = vector.broadcast %89 : vector<8x1xf32> to vector<8x256xf32>
    %91 = arith.mulf %88, %90 : vector<8x256xf32>
    %c0_41 = arith.constant 0 : index
    %c0_42 = arith.constant 0 : index
    %92 = vector.load %arg5[%c0_41, %c0_42] : memref<8x1xf32, #tpu.memory_space<vmem>>, vector<8x1xf32>
    %93 = vector.broadcast %92 : vector<8x1xf32> to vector<8x256xf32>
    %94 = arith.addf %91, %93 : vector<8x256xf32>
    %cst_43 = arith.constant 0.000000e+00 : f32
    %95 = vector.broadcast %cst_43 : f32 to vector<8x256xf32>
    %96 = arith.cmpf oge, %94, %95 : vector<8x256xf32>
    %cst_44 = arith.constant 0.00999999977 : f32
    %97 = vector.broadcast %cst_44 : f32 to vector<8x256xf32>
    %98 = arith.mulf %97, %94 : vector<8x256xf32>
    %99 = arith.select %96, %94, %98 : vector<8x256xi1>, vector<8x256xf32>
    %c0_45 = arith.constant 0 : index
    %c0_46 = arith.constant 0 : index
    %c0_47 = arith.constant 0 : index
    %100 = vector.load %arg6[%c0_45, %c0_46, %c0_47] : memref<1x8x256xf32, #tpu.memory_space<vmem>>, vector<1x8x256xf32>
    %101 = vector.shape_cast %100 : vector<1x8x256xf32> to vector<8x256xf32>
    %102 = vector.shape_cast %99 : vector<8x256xf32> to vector<1x8x256xf32>
    tpu.vector_store %arg6[%c0_45, %c0_46, %c0_47], %102 {strides = array<i32>} : memref<1x8x256xf32, #tpu.memory_space<vmem>>, vector<1x8x256xf32>,
    return
  }
  func.func @transform_0(%arg0: i32) -> (i32, i32, i32) {
    %c0_i32 = arith.constant 0 : i32
    %c0_i32_0 = arith.constant 0 : i32
    %c0_i32_1 = arith.constant 0 : i32
    return %arg0, %c0_i32, %c0_i32_0 : i32, i32, i32
  }
  func.func @transform_1(%arg0: i32) -> (i32, i32, i32) {
    %c0_i32 = arith.constant 0 : i32
    %c0_i32_0 = arith.constant 0 : i32
    %c0_i32_1 = arith.constant 0 : i32
    %c0_i32_2 = arith.constant 0 : i32
    return %c0_i32, %c0_i32_0, %c0_i32_1 : i32, i32, i32
  }
  func.func @transform_2(%arg0: i32) -> (i32, i32) {
    %c0_i32 = arith.constant 0 : i32
    %c0_i32_0 = arith.constant 0 : i32
    %c0_i32_1 = arith.constant 0 : i32
    return %c0_i32, %c0_i32_0 : i32, i32
  }
  func.func @transform_3(%arg0: i32) -> (i32, i32) {
    %c0_i32 = arith.constant 0 : i32
    %c0_i32_0 = arith.constant 0 : i32
    %c0_i32_1 = arith.constant 0 : i32
    return %c0_i32, %c0_i32_0 : i32, i32
  }
  func.func @transform_4(%arg0: i32) -> (i32, i32) {
    %c0_i32 = arith.constant 0 : i32
    %c0_i32_0 = arith.constant 0 : i32
    %c0_i32_1 = arith.constant 0 : i32
    return %c0_i32, %c0_i32_0 : i32, i32
  }
  func.func @transform_5(%arg0: i32) -> (i32, i32, i32) {
    %c0_i32 = arith.constant 0 : i32
    %c0_i32_0 = arith.constant 0 : i32
    %c0_i32_1 = arith.constant 0 : i32
    return %arg0, %c0_i32, %c0_i32_0 : i32, i32, i32
  }
}

</mosaic_0001>

<bundles_post_ra>
// kernel: tpu_custom_call.1
= control target key start
LH: loop header
LB: loop body
LE: loop exit
PB: predicated region body
PF: predicated region fallthrough
CT: control target
= control target key end

     0   :  { %10 = vsyncpa [#allocation3], 0  ;;  %s1637_s0 = inlined_call_operand.hbm [shape: bf16[2,16,256], index: 0, kind: input, shape index: {}]   ;;  %s1638_s1 = inlined_call_operand.hbm [shape: bf16[9,8,16], index: 1, kind: input, shape index: {}]   ;;  %s1639_s2 = inlined_call_operand.vmem [shape: f32[8,1], index: 2, kind: input, shape index: {}]   ;;  %s1640_s3 = inlined_call_operand.vmem [shape: f32[8,1], index: 3, kind: input, shape index: {}]   ;;  %s1641_s4 = inlined_call_operand.vmem [shape: f32[8,1], index: 4, kind: input, shape index: {}]   ;;  %s1642_s5 = inlined_call_operand.hbm [shape: f32[2,8,256], index: 5, kind: output, shape index: {}]  }
   0x1   :  { %12 = vsyncpa [#allocation3 + $0x1], 0 }
   0x2   :  { %13 = vsyncpa [#allocation6], 0 }
   0x3   :  { %14 = vsyncpa [#allocation4], 0 }
   0x4   :  { %16 = vsyncpa [#allocation4 + $0x1], 0  ;;  %s1319_s18 = smov 0   ;;  %s1321_s19 = smov 0  }
   0x5   :  { %s1323_s20 = smov 0   ;;  %s1325_s21 = smov 0  }
   0x6 LB: > { %s1340_s22 = sadd.s32 4294967295, %s1271_s21   ;;  %s1037_s23 = sadd.s32 4294967294, %s1271_s21   ;;  %s1271_s21 = sphi %s1325_s21, %s1662_s21   ;;  %s1267_s20 = sphi %s1323_s20, %s1661_s20   ;;  %s1263_s19 = sphi %s1321_s19, %s1660_s19   ;;  %s1259_s18 = sphi %s1319_s18, %s1659_s18  }
   0x7   : > { %p42_p0 = scmp.ne.s32.totalorder %s1263_s19, %s1259_s18  ;;  %p1643_p1 = scmp.eq.s32.totalorder %s1340_s22, 0 }
   0x8   : > { %p156_p3 = scmp.eq.s32.totalorder %s1037_s23, 1  ;;  %p1038_p5 = scmp.ge.s32.totalorder %s1271_s21, 1 }
   0x9   : > { %p1349_p4 = por %p1643_p1, %p42_p0  ;;  %p163_p7 = scmp.lt.s32.totalorder %s1271_s21, 3 }
   0xa   : > { %p1354_p6 = por %p156_p3, %p42_p0  ;;  %s1273_s27 = smov [#allocation5]  }
   0xb   : > { %s1646_s24 = scalar_select %p1349_p4, 1, 0 }
   0xc   : > { %s1647_s25 = scalar_select %p1354_p6, 1, 0 }
   0xd   : > { %p1359_p8 = pnand %p1038_p5, %p163_p7  ;;  %s175_s28 = sshll.u32 %s1273_s27, 4  ;;  %s1363_s28 = int_to_ptr.vmem [resolvable:$true] %s175_s28 }
   0xe   : > { %s1375_s30 = sadd.s32 1, %s1271_s21   ;;  %s29_s6 = sadd.s32 1, %s1267_s20 }
   0xf   : > { %s1648_s26 = scalar_select %p1359_p8, 1, 0 }
  0x10   : > { %p1074_p9 = pneg %p1359_p8  ;;  %s26_s7 = ssub.s32 %s1271_s21, %s1375_s30 }
  0x11   : > { %s1143_s10 = scalar_lea.hbm %s1638_s1, 576 }
  0x12   : > { %p1370_p11 = pnand %p1074_p9, %p1643_p1  ;;  %p1144_p12 = scmp.ne.s32.totalorder %s1638_s1, %s1143_s10 }
  0x13   : > { %p1150_p5 = scmp.lt.u32.totalorder %s1143_s10, %s1638_s1 }
  0x14   : > { %p1145_p13 = pneg %p1370_p11 }
  0x16   : > { %p1146_p0 = pnand %p1145_p13, %p1144_p12 }
  0x18   : > { %p1147_p3 = pneg %p1146_p0 }
  0x1a   : > { %p1152_p7 = pnand %p1150_p5, %p1147_p3 }
  0x1c   : > { %1155 = shalt.err (!%p1152_p7)
}
  0x1d   : > { %s1156_s15 = scalar_lea.vmem %s1363_s28, 576  ;;  %p1164_p2 = scmp.lt.s32.totalorder %s1363_s28, %s1363_s28 }
  0x1e   : > { %p1157_p9 = scmp.ne.s32.totalorder %s1363_s28, %s1156_s15  ;;  %p1165_p6 = scmp.lt.s32.totalorder %s1156_s15, %s1156_s15 }
  0x20   : > { %p1159_p10 = pnand %p1157_p9, %p1145_p13  ;;  %p1166_p4 = por %p1165_p6, %p1164_p2 }
  0x22   : > { %p1160_p1 = pneg %p1159_p10 }
  0x24   : > { %p1167_p8 = pnand %p1166_p4, %p1160_p1 }
  0x26   : > { %1170 = shalt.err (!%p1167_p8)
}
  0x27   : > { %s1274_s16 = smov 64   ;;  %s1275_s17 = smov 4  }
  0x28   : > { %1077 = dma.hbm_to_vmem [thread:$0]  (!%p1370_p11), %s1638_s1, 576, %s1363_s28, [#allocation6], %s1274_s16, %s1274_s16, %s1275_s17  }
  0x29   : > { %p27_p2 = scmp.eq.s32.totalorder %s26_s7, 0  ;;  %p36_p1 = scmp.ne.s32.totalorder %s1267_s20, %s1263_s19 }
  0x2a   : > { %p37_p4 = scmp.eq.s32.totalorder %s1271_s21, 0  ;;  %p1087_p6 = scmp.lt.s32.totalorder %s1271_s21, 2 }
  0x2b   : > { %s1406_s8 = scalar_select %p27_p2, %s1267_s20, %s29_s6  }
  0x2c   : > { %p38_p8 = por %p37_p4, %p36_p1  ;;  %p1650_p10 = scmp.eq.s32.totalorder %s1340_s22, 1 }
  0x2d   : > { %s198_s10 = sand.u32 1, %s1267_s20   ;;  %s1064_s11 = sshll.u32 %s1271_s21, 8 }
  0x2e   : > { %p1410_p12 = por %p1650_p10, %p36_p1  ;;  %s1041_s12 = sshll.u32 %s198_s10, 4 }
  0x2f   : > { %s1419_s14 = scalar_lea.hbm %s1637_s0, %s1064_s11  ;;  %s202_s28 = scalar_lea.vmem [#allocation2], %s1041_s12 }
  0x30   : > { %s209_s6 = sshll.u32 %s202_s28, 4  ;;  %p1421_p11 = pnand %p1087_p6, %p38_p8  ;;  %s1425_s6 = int_to_ptr.vmem [resolvable:$true] %s209_s6 }
  0x31   : > { %s1427_s15 = scalar_lea.sflag [#allocation3], %s198_s10  ;;  %s1171_s16 = scalar_lea.hbm %s1419_s14, 256 }
  0x32   : > { %p1172_p13 = scmp.ne.s32.totalorder %s1419_s14, %s1171_s16  ;;  %p1173_p0 = pneg %p1421_p11 }
  0x33   : > { %s1176_s27 = scalar_lea.hbm %s1637_s0, 512  ;;  %p1177_p7 = scmp.lt.u32.totalorder %s1419_s14, %s1637_s0 }
  0x34   : > { %p1174_p3 = pnand %p1173_p0, %p1172_p13  ;;  %p1178_p9 = scmp.lt.u32.totalorder %s1176_s27, %s1171_s16 }
  0x35   : > { %p1180_p1 = scmp.lt.u32.totalorder %s1171_s16, %s1419_s14 }
  0x36   : > { %p1175_p5 = pneg %p1174_p3  ;;  %p1179_p2 = por %p1178_p9, %p1177_p7 }
  0x38   : > { %p1181_p4 = por %p1180_p1, %p1179_p2 }
  0x3a   : > { %p1182_p6 = pnand %p1181_p4, %p1175_p5 }
  0x3c   : > { %1185 = shalt.err (!%p1182_p6)
}
  0x3d   : > { %s1186_s10 = scalar_lea.vmem %s1425_s6, 256  ;;  %s1276_s29 = smov [#allocation2]  }
  0x3e   : > { %p1187_p8 = scmp.ne.s32.totalorder %s1425_s6, %s1186_s10  ;;  %s1191_s13 = sshll.u32 %s1276_s29, 4  ;;  %s1192_s13 = int_to_ptr.vmem [resolvable:$false] %s1191_s13 }
  0x3f   : > { %s1193_s28 = scalar_lea.vmem %s1192_s13, 512  ;;  %p1194_p3 = scmp.lt.s32.totalorder %s1425_s6, %s1192_s13 }
  0x40   : > { %p1189_p10 = pnand %p1187_p8, %p1173_p0  ;;  %p1195_p7 = scmp.lt.s32.totalorder %s1193_s28, %s1186_s10 }
  0x42   : > { %p1190_p13 = pneg %p1189_p10  ;;  %p1196_p9 = por %p1195_p7, %p1194_p3 }
  0x44   : > { %p1197_p2 = pnand %p1196_p9, %p1190_p13 }
  0x46   : > { %1200 = shalt.err (!%p1197_p2)
}
  0x47   : > { %s1277_s16 = smov 128   ;;  %s1278_s17 = smov 8  }
  0x48   : > { %1081 = dma.hbm_to_vmem [thread:$0]  (!%p1421_p11), %s1419_s14, 256, %s1425_s6, %s1427_s15, %s1277_s16, %s1277_s16, %s1278_s17  }
  0x49   : > { %p1653_p0 = scmp.ne.s32.totalorder %s1648_s26, 0 }
  0x4a   : > { %s1458_s23 = sand.u32 (!%p1653_p0), 1, %s1263_s19   ;;  %p1654_p5 = scmp.ne.s32.totalorder (!%p1653_p0), %s1646_s24, 0 }
  0x4b   : > { %221 = sbr.rel (%p1653_p0) target bundleno = 920 (0x398), region = 40  ;;  %s1045_s27 = sshll.u32 (!%p1653_p0), %s1458_s23, 4 }
  0x4c   : > { %s224_s11 = scalar_lea.sflag (!%p1653_p0), [#allocation3], %s1458_s23  ;;  %s1464_s12 = scalar_lea.vmem (!%p1653_p0), [#allocation2], %s1045_s27 }
  0x52   : > { %1246 = dma.done.wait (%p1654_p5), %s224_s11, 256  }
  0x53   : > { %1248 = vsyncadd (%p1654_p5), %s224_s11, 4294967040  ;;  %v273_v0 = vlaneseq  ;;  %p1655_p11 = scmp.eq.s32.totalorder %s1340_s22, 0 }
  0x55   : > { %1250 = dma.done.wait (%p1655_p11), [#allocation6], 576   ;;  %p1656_p1 = pmov %p1655_p11 }
  0x56   : > { %v1279_v1 = vmov 0   ;;  %v274_v2 = vand.u32 127, %v273_v0  ;;  %v293_v3 = vshrl.u32 %v273_v0, 7  ;;  %s1280_s24 = smov 113   ;;  %s1281_s26 = smov 111   ;;  %vm304_vm6 = vcmask 908288  }
  0x57   : > { %1252 = vsyncadd (%p1656_p1), [#allocation6], 4294966720  ;;  %361 = vmatprep.mubr.bf16.mxu0 %v1279_v1  ;;  %418 = vmatprep.mubr.bf16.mxu1 %v1279_v1  ;;  %s1282_s14 = smov 127   ;;  %s1283_s6 = smov 1   ;;  %v1492_v15 = vld [vmem:[%s1464_s12 + $0x4] ss:$8 sps:$4 sm:$0xff]  }
  0x58   : > { %1136 = vset.pattern.permute.xlu0 %v1279_v1  ;;  %1137 = vset.pattern.permute.xlu1 %v1279_v1  ;;  %v275_v4 = vadd.s32 128, %v274_v2  ;;  %v276_v5 = vand.u32 15, %v274_v2  ;;  %v294_v7 = vsub.s32 0, %v293_v3  ;;  %v298_v8 = vsub.s32 4, %v293_v3  ;;  %s1284_s7 = smov 15   ;;  %s1285_s15 = smov 17  }
  0x59   : > { %v1496_v16 = vld [vmem:[%s1464_s12] ss:$8 sps:$4 sm:$0xff]   ;;  %s1286_s10 = smov 16   ;;  %vm441_vm8 = vcmask 924672   ;;  %vm512_vm12 = vcmask 1039360   ;;  %s1287_s29 = smov 112  }
  0x5a   : > { %v277_v6 = vand.u32 15, %v275_v4  ;;  %vm284_vm0 = vcmp.le.s32.totalorder %v276_v5, 14  ;;  %vm278_vm1 = vcmp.ge.s32.totalorder %v276_v5, 1  ;;  %v312_v50 = vld [vmem:[#allocation5 + $0x4] sm:$0xf] }
  0x5b   : > { %v893_v53 = vld [vmem:[%s1639_s2] sm:$0xff] }
  0x5c   : > { %vm285_vm2 = vcmp.le.s32.totalorder %v277_v6, 14  ;;  %vm279_vm3 = vcmp.ge.s32.totalorder %v277_v6, 1  ;;  %v310_v63 = vld [vmem:[#allocation5] sm:$0xf]  ;;  %v448_v6 = vld [vmem:[#allocation5 + $0x8] sm:$0xf] }
  0x5d   : > { %vm427_vm4 = vmpackc.low %vm285_vm2, %vm284_vm0  ;;  %vm457_vm0 = vcmask 121856  }
  0x5e   : > { %v428_v9 = vsel %vm427_vm4, 65537, %v1279_v1  ;;  %vm290_vm5 = vmpackc.low %vm279_vm3, %vm278_vm1  ;;  %vm528_vm1 = vcmask 7168   ;;  %vm378_vm4 = vcmask 138240  }
  0x5f   : > { %v432_v10 = vrot.slane %v428_v9, %v294_v7  ;;  %v291_v11 = vsel %vm290_vm5, 65537, %v1279_v1  ;;  %v436_v13 = vrot.slane %v428_v9, %v298_v8  ;;  %vm320_vm5 = vcmask 130048  }
  0x60   : > { %v295_v12 = vrot.slane %v291_v11, %v294_v7  ;;  %v299_v14 = vrot.slane %v291_v11, %v298_v8 }
  0x61   : > { %437 = vrot.lane.b32.xlu1 %v432_v10, %s1280_s24 }
  0x62   : > { %300 = vrot.lane.b32.xlu0 %v295_v12, %s1281_s26 }
  0x65   : > { %439 = vrot.lane.b32.xlu1 %v436_v13, %s1280_s24 }
  0x66   : > { %302 = vrot.lane.b32.xlu0 %v299_v14, %s1281_s26 }
  0x69   : > { %510 = vrot.lane.b32.xlu1 %v299_v14, %s1282_s14 }
  0x6a   : > { %508 = vrot.lane.b32.xlu0 %v295_v12, %s1282_s14 }
  0x6d   : > { %629 = vrot.lane.b32.xlu1 %v436_v13, %s1283_s6 }
  0x6e   : > { %627 = vrot.lane.b32.xlu0 %v432_v10, %s1283_s6 }
  0x71   : > { %698 = vrot.lane.b32.xlu1 %v299_v14, %s1284_s7  ;;  %v580_v14 = vld [vmem:[#allocation5 + $0x10] sm:$0xf] }
  0x72   : > { %696 = vrot.lane.b32.xlu0 %v295_v12, %s1284_s7 }
  0x75   : > { %826 = vrot.lane.b32.xlu1 %v436_v13, %s1285_s15 }
  0x76   : > { %824 = vrot.lane.b32.xlu0 %v432_v10, %s1285_s15  ;;  %v519_v10 = vld [vmem:[#allocation5 + $0xc] sm:$0xf] }
  0x79   : > { %318 = vrot.lane.b32.xlu1 %v1492_v15, %s1286_s10 }
  0x7a   : > { %316 = vrot.lane.b32.xlu0 %v1496_v16, %s1286_s10 }
  0x7d   : > { %372 = vrot.lane.b32.xlu1 %v1279_v1, %s1285_s15 }
  0x7e   : > { %314 = vrot.lane.b32.xlu0 %v1279_v1, %s1286_s10  ;;  %s1288_s10 = smov [#allocation7]  }
  0x81   : > { %522 = vrot.lane.b32.xlu1 %v1279_v1, %s1283_s6 }
  0x82   : > { %451 = vrot.lane.b32.xlu0 %v1279_v1, %s1284_s7 }
  0xd3   : > { %v438_v17 = vpop.permute.xlu1 %437 }
  0xd4   : > { %v301_v18 = vpop.permute.xlu0 %300 }
  0xd7   : > { %v440_v19 = vpop.permute.xlu1 %439 }
  0xd8   : > { %vm444_vm7 = vcmp.ne.s16.totalorder %v440_v19, 0  ;;  %v303_v20 = vpop.permute.xlu0 %302  ;;  %v442_v25 = vsel %vm441_vm8, %v438_v17, %v440_v19 }
  0xd9   : > { %v305_v21 = vsel %vm304_vm6, %v301_v18, %v303_v20  ;;  %vm307_vm9 = vcmp.ne.s16.totalorder %v303_v20, 0  ;;  %v446_v22 = vsel %vm444_vm7, %v1492_v15, 0  ;;  %vm443_vm13 = vcmp.ne.s16.totalorder %v442_v25, 0  ;;  %v706_v25 = vld [vmem:[#allocation5 + $0x18] sm:$0xf] }
  0xda   : > { %vm306_vm10 = vcmp.ne.s16.totalorder %v305_v21, 0  ;;  %455 = vrot.lane.b32.xlu1 %v446_v22, %s1284_s7  ;;  %v309_v23 = vsel %vm307_vm9, %v1492_v15, 0  ;;  %v445_v32 = vsel %vm443_vm13, %v1496_v16, 0  ;;  %v637_v21 = vld [vmem:[#allocation5 + $0x14] sm:$0xf] }
  0xdb   : > { %376 = vrot.lane.b32.xlu0 %v309_v23, %s1285_s15  ;;  %v511_v24 = vpop.permute.xlu1 %510  ;;  %v308_v28 = vsel %vm306_vm10, %v1496_v16, 0 }
  0xdc   : > { %vm515_vm11 = vcmp.ne.s16.totalorder %v511_v24, 0  ;;  %v509_v26 = vpop.permute.xlu0 %508 }
  0xdd   : > { %v517_v27 = vsel %vm515_vm11, %v1492_v15, 0  ;;  %v513_v29 = vsel %vm512_vm12, %v509_v26, %v511_v24  ;;  %vm773_vm11 = vcmask 916480  }
  0xde   : > { %374 = vrot.lane.b32.xlu1 %v308_v28, %s1285_s15  ;;  %vm514_vm15 = vcmp.ne.s16.totalorder %v513_v29, 0  ;;  %v766_v29 = vld [vmem:[#allocation5 + $0x1c] sm:$0xf] }
  0xdf   : > { %526 = vrot.lane.b32.xlu0 %v517_v27, %s1283_s6  ;;  %v630_v30 = vpop.permute.xlu1 %629  ;;  %v516_v36 = vsel %vm514_vm15, %v1496_v16, 0 }
  0xe0   : > { %v628_v31 = vpop.permute.xlu0 %627 }
  0xe1   : > { %vm632_vm14 = vcmp.ne.s16.totalorder %v628_v31, 0  ;;  %v631_v40 = vsel %vm528_vm1, %v628_v31, %v630_v30 }
  0xe2   : > { %644 = vrot.lane.b32.xlu1 %v1279_v1, %s1282_s14  ;;  %v634_v34 = vsel %vm632_vm14, %v1496_v16, 0  ;;  %vm633_vm7 = vcmp.ne.s16.totalorder %v631_v40, 0 }
  0xe3   : > { %453 = vrot.lane.b32.xlu0 %v445_v32, %s1284_s7  ;;  %v699_v33 = vpop.permute.xlu1 %698  ;;  %v635_v47 = vsel %vm633_vm7, %v1492_v15, 0 }
  0xe4   : > { %v697_v35 = vpop.permute.xlu0 %696 }
  0xe5   : > { %vm701_vm2 = vcmp.ne.s16.totalorder %v697_v35, 0  ;;  %v700_v37 = vsel %vm457_vm0, %v697_v35, %v699_v33  ;;  %v834_v33 = vld [vmem:[#allocation5 + $0x20] sm:$0xf] }
  0xe6   : > { %524 = vrot.lane.b32.xlu1 %v516_v36, %s1283_s6  ;;  %v703_v38 = vsel %vm701_vm2, %v1496_v16, 0  ;;  %vm702_vm3 = vcmp.ne.s16.totalorder %v700_v37, 0 }
  0xe7   : > { %640 = vrot.lane.b32.xlu0 %v634_v34, %s1282_s14  ;;  %v827_v39 = vpop.permute.xlu1 %826  ;;  %v704_v44 = vsel %vm702_vm3, %v1492_v15, 0 }
  0xe8   : > { %v825_v41 = vpop.permute.xlu0 %824 }
  0xe9   : > { %v828_v45 = vsel %vm378_vm4, %v825_v41, %v827_v39  ;;  %vm829_vm10 = vcmp.ne.s16.totalorder %v825_v41, 0 }
  0xea   : > { %709 = vrot.lane.b32.xlu1 %v703_v38, %s1280_s24  ;;  %vm830_vm9 = vcmp.ne.s16.totalorder %v828_v45, 0  ;;  %v831_v52 = vsel %vm829_vm10, %v1496_v16, 0 }
  0xeb   : > { %713 = vrot.lane.b32.xlu0 %v1279_v1, %s1280_s24  ;;  %v319_v42 = vpop.permute.xlu1 %318  ;;  %v832_v51 = vsel %vm830_vm9, %v1492_v15, 0 }
  0xec   : > { %v317_v43 = vpop.permute.xlu0 %316 }
  0xed   : > { %v322_v46 = vsel %vm320_vm5, %v317_v43, %v319_v42 }
  0xee   : > { %711 = vrot.lane.b32.xlu1 %v704_v44, %s1280_s24  ;;  %329 = vmatprep.subr.bf16.mxu0 %v322_v46  ;;  %s1065_s24 = sshll.u32 %s1340_s22, 8  ;;  %s943_s22 = scalar_lea.sflag [#allocation4], %s1458_s23 }
  0xef   : > { %642 = vrot.lane.b32.xlu0 %v635_v47, %s1282_s14  ;;  %v373_v54 = vpop.permute.xlu1 %372  ;;  %s1593_s15 = scalar_lea.hbm %s1642_s5, %s1065_s24 }
  0xf0   : > { %v315_v48 = vpop.permute.xlu0 %314 }
  0xf1   : > { %v321_v49 = vsel %vm320_vm5, %v315_v48, %v317_v43 }
  0xf2   : > { %771 = vrot.lane.b32.xlu1 %v1279_v1, %s1287_s29  ;;  %330 = vmatpush1.bf16.msra.mxu0 %v321_v49 }
  0xf3   : > { %769 = vrot.lane.b32.xlu0 %v1492_v15, %s1287_s29  ;;  %v523_v55 = vpop.permute.xlu1 %522 }
  0xf4   : > { %v452_v56 = vpop.permute.xlu0 %451 }
  0xf5   : > { %1050 = vmatmul.mubr.msk.bf16.vlgmr.msra.gmra.mrb[0].mxu0 %vm320_vm5, %v312_v50 }
  0xf6   : > { %839 = vrot.lane.b32.xlu1 %v832_v51, %s1281_s26  ;;  %497 = vmatprep.mubr.bf16.mxu0 %v1279_v1 }
  0xf7   : > { %767 = vrot.lane.b32.xlu0 %v1496_v16, %s1287_s29  ;;  %s1205_s29 = sshll.u32 %s1288_s10, 4  ;;  %s1206_s29 = int_to_ptr.vmem [resolvable:$false] %s1205_s29 }
  0xf8   : > { %s1207_s13 = scalar_lea.vmem %s1206_s29, 512 }
  0xfa   : > { %837 = vrot.lane.b32.xlu1 %v831_v52, %s1281_s26 }
  0xfb   : > { %841 = vrot.lane.b32.xlu0 %v1279_v1, %s1281_s26  ;;  %s257_s26 = scalar_lea.vmem [#allocation7], %s1045_s27 }
  0xfc   : > { %s957_s14 = sshll.u32 %s257_s26, 4  ;;  %s1595_s14 = int_to_ptr.vmem [resolvable:$true] %s957_s14 }
  0xfd   : > { %s1201_s27 = scalar_lea.vmem %s1595_s14, 256  ;;  %p1208_p10 = scmp.lt.s32.totalorder %s1595_s14, %s1206_s29 }
  0xfe   : > { %p1202_p4 = scmp.ne.s32.totalorder %s1595_s14, %s1201_s27  ;;  %p1209_p13 = scmp.lt.s32.totalorder %s1207_s13, %s1201_s27 }
  0xff   : > { %896 = vperm.xlu0 %1136, %v893_v53  }
 0x100   : > { %p1203_p6 = pnand %p1202_p4, %p1410_p12  ;;  %p1210_p3 = por %p1209_p13, %p1208_p10 }
 0x102   : > { %p1204_p8 = pneg %p1203_p6 }
 0x104   : > { %p1211_p7 = pnand %p1210_p3, %p1204_p8 }
 0x14c   : > { %v456_v57 = vpop.permute.xlu1 %455 }
 0x14d   : > { %v377_v58 = vpop.permute.xlu0 %376 }
 0x150   : > { %v375_v59 = vpop.permute.xlu1 %374 }
 0x151   : > { %v527_v60 = vpop.permute.xlu0 %526  ;;  %v380_v61 = vsel %vm378_vm4, %v375_v59, %v377_v58  ;;  %v379_v62 = vsel %vm378_vm4, %v373_v54, %v375_v59 }
 0x152   : > { %386 = vmatprep.subr.bf16.mxu1 %v380_v61 }
 0x153   : > { %387 = vmatpush1.bf16.msra.mxu1 %v379_v62 }
 0x154   : > { %v645_v0 = vpop.permute.xlu1 %644 }
 0x155   : > { %v454_v2 = vpop.permute.xlu0 %453 }
 0x156   : > { %v458_v3 = vsel %vm457_vm0, %v452_v56, %v454_v2  ;;  %1051 = vmatmul.mubr.msk.bf16.vlgmr.msra.gmra.mrb[0].mxu1 %vm320_vm5, %v310_v63  ;;  %v459_v4 = vsel %vm457_vm0, %v454_v2, %v456_v57 }
 0x157   : > { %465 = vmatprep.subr.bf16.mxu0 %v459_v4  ;;  %568 = vmatprep.mubr.bf16.mxu1 %v1279_v1 }
 0x158   : > { %466 = vmatpush1.bf16.msra.mxu0 %v458_v3  ;;  %v525_v5 = vpop.permute.xlu1 %524 }
 0x159   : > { %v641_v7 = vpop.permute.xlu0 %640  ;;  %v529_v8 = vsel %vm528_vm1, %v523_v55, %v525_v5  ;;  %v530_v9 = vsel %vm528_vm1, %v525_v5, %v527_v60  ;;  %584 = vmatprep.subr.bf16.mxu0 %v1492_v15 }
 0x15a   : > { %536 = vmatprep.subr.bf16.mxu1 %v530_v9 }
 0x15b   : > { %1052 = vmatmul.mubr.msk.bf16.vlgmr.msra.gmra.mrb[4].mxu0 %vm320_vm5, %v448_v6  ;;  %537 = vmatpush1.bf16.msra.mxu1 %v529_v8 }
 0x15c   : > { %v710_v11 = vpop.permute.xlu1 %709  ;;  %585 = vmatpush1.bf16.msra.mxu0 %v1496_v16  ;;  %616 = vmatprep.mubr.bf16.mxu0 %v1279_v1 }
 0x15d   : > { %v714_v12 = vpop.permute.xlu0 %713 }
 0x15e   : > { %1053 = vmatmul.mubr.msk.bf16.vlgmr.msra.gmra.mrb[4].mxu1 %vm320_vm5, %v519_v10 }
 0x15f   : > { %685 = vmatprep.mubr.bf16.mxu1 %v1279_v1 }
 0x160   : > { %v712_v13 = vpop.permute.xlu1 %711 }
 0x161   : > { %v643_v17 = vpop.permute.xlu0 %642  ;;  %v715_v15 = vsel %vm441_vm8, %v710_v11, %v712_v13  ;;  %v716_v18 = vsel %vm441_vm8, %v712_v13, %v714_v12 }
 0x162   : > { %v646_v19 = vsel %vm512_vm12, %v641_v7, %v643_v17  ;;  %v647_v20 = vsel %vm512_vm12, %v643_v17, %v645_v0  ;;  %722 = vmatprep.subr.bf16.mxu0 %v716_v18 }
 0x163   : > { %1054 = vmatmul.mubr.msk.bf16.vlgmr.msra.gmra.mrb[8].mxu0 %vm320_vm5, %v580_v14  ;;  %653 = vmatprep.subr.bf16.mxu1 %v647_v20 }
 0x164   : > { %654 = vmatpush1.bf16.msra.mxu1 %v646_v19  ;;  %723 = vmatpush1.bf16.msra.mxu0 %v715_v15  ;;  %v772_v16 = vpop.permute.xlu1 %771 }
 0x165   : > { %v770_v22 = vpop.permute.xlu0 %769  ;;  %754 = vmatprep.mubr.bf16.mxu0 %v1279_v1 }
 0x166   : > { %v775_v23 = vsel %vm773_vm11, %v770_v22, %v772_v16 }
 0x167   : > { %1055 = vmatmul.mubr.msk.bf16.vlgmr.msra.gmra.mrb[8].mxu1 %vm320_vm5, %v637_v21  ;;  %781 = vmatprep.subr.bf16.mxu1 %v775_v23 }
 0x168   : > { %v840_v24 = vpop.permute.xlu1 %839  ;;  %813 = vmatprep.mubr.bf16.mxu1 %v1279_v1 }
 0x169   : > { %v768_v26 = vpop.permute.xlu0 %767 }
 0x16a   : > { %v774_v27 = vsel %vm773_vm11, %v768_v26, %v770_v22  ;;  %v918_v26 = vld [vmem:[%s1640_s3] sm:$0xff] }
 0x16b   : > { %1056 = vmatmul.mubr.msk.bf16.vlgmr.msra.gmra.mrb[12].mxu0 %vm320_vm5, %v706_v25  ;;  %782 = vmatpush1.bf16.msra.mxu1 %v774_v27 }
 0x16c   : > { %v838_v28 = vpop.permute.xlu1 %837  ;;  %882 = vmatprep.mubr.bf16.mxu0 %v1279_v1 }
 0x16d   : > { %v842_v30 = vpop.permute.xlu0 %841  ;;  %v843_v31 = vsel %vm304_vm6, %v838_v28, %v840_v24 }
 0x16e   : > { %v844_v32 = vsel %vm304_vm6, %v840_v24, %v842_v30 }
 0x16f   : > { %1057 = vmatmul.mubr.msk.bf16.vlgmr.msra.gmra.mrb[12].mxu1 %vm320_vm5, %v766_v29  ;;  %850 = vmatprep.subr.bf16.mxu0 %v844_v32 }
 0x170   : > { %851 = vmatpush1.bf16.msra.mxu0 %v843_v31 }
 0x173   : > { %1058 = vmatmul.mubr.msk.bf16.vlgmr.msra.gmra.mrb[16].mxu0 %vm320_vm5, %v834_v33 }
 0x17e   : > { %v897_v18 = vpop.permute.xlu0 %896 }
 0x1c8   : > { %v363_v34 = vpop.f32.mrb[0].mxu0 }
 0x1c9   : > { %v365_v35 = vpop.f32.mrb[1].mxu0 }
 0x1ca   : > { %v367_v36 = vpop.f32.mrb[2].mxu0 }
 0x1cb   : > { %v368_v37 = vpop.f32.mrb[3].mxu0 }
 0x229   : > { %v420_v38 = vpop.f32.mrb[0].mxu1 }
 0x22a   : > { %v421_v39 = vadd.f32 %v420_v38, %v363_v34  ;;  %v422_v40 = vpop.f32.mrb[1].mxu1  ;;  %v926_v34 = vld [vmem:[%s1641_s4] sm:$0xff] }
 0x22b   : > { %v423_v1 = vadd.f32 %v422_v40, %v365_v35  ;;  %v424_v41 = vpop.f32.mrb[2].mxu1 }
 0x22c   : > { %v425_v42 = vpop.f32.mrb[3].mxu1 }
 0x22e   : > { %v499_v43 = vpop.f32.mrb[4].mxu0 }
 0x22f   : > { %v506_v44 = vadd.f32 %v499_v43, %v421_v39  ;;  %v501_v45 = vpop.f32.mrb[5].mxu0 }
 0x230   : > { %v507_v46 = vadd.f32 %v501_v45, %v423_v1  ;;  %v503_v47 = vpop.f32.mrb[6].mxu0 }
 0x231   : > { %v570_v48 = vpop.f32.mrb[4].mxu1  ;;  %v504_v49 = vpop.f32.mrb[7].mxu0 }
 0x232   : > { %v577_v50 = vadd.f32 %v570_v48, %v506_v44  ;;  %v572_v51 = vpop.f32.mrb[5].mxu1 }
 0x233   : > { %v578_v52 = vadd.f32 %v572_v51, %v507_v46  ;;  %v574_v53 = vpop.f32.mrb[6].mxu1 }
 0x234   : > { %v575_v54 = vpop.f32.mrb[7].mxu1 }
 0x236   : > { %v618_v55 = vpop.f32.mrb[8].mxu0 }
 0x237   : > { %v625_v56 = vadd.f32 %v618_v55, %v577_v50  ;;  %v620_v57 = vpop.f32.mrb[9].mxu0 }
 0x238   : > { %v626_v58 = vadd.f32 %v620_v57, %v578_v52  ;;  %v622_v59 = vpop.f32.mrb[10].mxu0 }
 0x239   : > { %v623_v60 = vpop.f32.mrb[11].mxu0 }
 0x23a   : > { %v687_v61 = vpop.f32.mrb[8].mxu1 }
 0x23b   : > { %v694_v62 = vadd.f32 %v687_v61, %v625_v56  ;;  %v689_v63 = vpop.f32.mrb[9].mxu1 }
 0x23c   : > { %v695_v0 = vadd.f32 %v689_v63, %v626_v58  ;;  %v691_v2 = vpop.f32.mrb[10].mxu1 }
 0x23d   : > { %v692_v3 = vpop.f32.mrb[11].mxu1 }
 0x23e   : > { %v756_v4 = vpop.f32.mrb[12].mxu0 }
 0x23f   : > { %v763_v5 = vadd.f32 %v756_v4, %v694_v62  ;;  %v758_v6 = vpop.f32.mrb[13].mxu0 }
 0x240   : > { %v764_v7 = vadd.f32 %v758_v6, %v695_v0  ;;  %v760_v8 = vpop.f32.mrb[14].mxu0 }
 0x241   : > { %v761_v9 = vpop.f32.mrb[15].mxu0 }
 0x242   : > { %v815_v10 = vpop.f32.mrb[12].mxu1 }
 0x243   : > { %v822_v11 = vadd.f32 %v815_v10, %v763_v5  ;;  %v817_v12 = vpop.f32.mrb[13].mxu1 }
 0x244   : > { %v823_v13 = vadd.f32 %v817_v12, %v764_v7  ;;  %v819_v14 = vpop.f32.mrb[14].mxu1 }
 0x245   : > { %v820_v17 = vpop.f32.mrb[15].mxu1 }
 0x246   : > { %v884_v15 = vpop.f32.mrb[16].mxu0 }
 0x247   : > { %v891_v19 = vadd.f32 %v884_v15, %v822_v11  ;;  %v886_v20 = vpop.f32.mrb[17].mxu0 }
 0x248   : > { %v892_v16 = vadd.f32 %v886_v20, %v823_v13  ;;  %v888_v21 = vpop.f32.mrb[18].mxu0 }
 0x249   : > { %v899_v22 = vadd.f32 %v897_v18, %v891_v19  ;;  %v889_v23 = vpop.f32.mrb[19].mxu0 }
 0x24a   : > { %v900_v24 = vadd.f32 %v897_v18, %v892_v16 }
 0x24c   : > { %v901_v25 = vadd.f32 %v900_v24, %v899_v22 }
 0x24e   : > { %902 = vadd.xlane.f32.xlu1 %v901_v25 }
 0x25f   : > { %921 = vperm.xlu1 %1137, %v918_v26  }
 0x2db   : > { %v903_v27 = vpop.xlane.xlu1 %902 }
 0x2dc   : > { %v905_v28 = vmul.f32 0.00390625, %v903_v27 }
 0x2de   : > { %v906_v29 = vsub.f32 %v899_v22, %v905_v28  ;;  %v907_v30 = vsub.f32 %v900_v24, %v905_v28 }
 0x2df   : > { %v922_v39 = vpop.permute.xlu1 %921 }
 0x2e0   : > { %v908_v31 = vmul.f32 %v906_v29, %v906_v29  ;;  %v909_v32 = vmul.f32 %v907_v30, %v907_v30 }
 0x2e2   : > { %v910_v33 = vadd.f32 %v909_v32, %v908_v31 }
 0x2e4   : > { %911 = vadd.xlane.f32.xlu0 %v910_v33 }
 0x2fa   : > { %929 = vperm.xlu0 %1136, %v926_v34  }
 0x371   : > { %v912_v35 = vpop.xlane.xlu0 %911 }
 0x372   : > { %v913_v36 = vmul.f32 0.00390625, %v912_v35 }
 0x374   : > { %v914_v37 = vadd.f32 1e-05, %v913_v36 }
 0x376   : > { %1141 = vrsqrt.f32 %v914_v37 }
 0x379   : > { %v930_v43 = vpop.permute.xlu0 %929 }
 0x380   : > { %v1142_v38 = vpop.eup %1141 }
 0x381   : > { %v916_v40 = vmul.f32 %v1142_v38, %v906_v29  ;;  %v917_v1 = vmul.f32 %v1142_v38, %v907_v30 }
 0x383   : > { %v924_v41 = vmul.f32 %v922_v39, %v916_v40  ;;  %v925_v42 = vmul.f32 %v922_v39, %v917_v1 }
 0x385   : > { %v932_v44 = vadd.f32 %v930_v43, %v924_v41  ;;  %v933_v45 = vadd.f32 %v930_v43, %v925_v42 }
 0x387   : > { %vm934_vm6 = vcmp.ge.f32.partialorder %v932_v44, 0.0  ;;  %vm935_vm8 = vcmp.ge.f32.partialorder %v933_v45, 0.0  ;;  %v936_v46 = vmul.f32 0.01, %v932_v44  ;;  %v937_v47 = vmul.f32 0.01, %v933_v45 }
 0x389   : > { %v938_v48 = vsel %vm934_vm6, %v932_v44, %v936_v46  ;;  %v939_v49 = vsel %vm935_vm8, %v933_v45, %v937_v47 }
 0x38a   : > { %940 = vst [vmem:[%s257_s26] sm:$0xff] %v938_v48  ;;  %941 = vst [vmem:[%s257_s26 + $0x8] sm:$0xff] %v939_v49 }
 0x38b   : > { %1214 = shalt.err (!%p1211_p7)
}
 0x38c   : > { %s1215_s23 = scalar_lea.hbm %s1593_s15, 256  ;;  %s1219_s17 = scalar_lea.hbm %s1642_s5, 512 }
 0x38d   : > { %p1216_p9 = scmp.ne.s32.totalorder %s1593_s15, %s1215_s23  ;;  %p1220_p5 = scmp.lt.u32.totalorder %s1593_s15, %s1642_s5 }
 0x38e   : > { %p1221_p11 = scmp.lt.u32.totalorder %s1219_s17, %s1215_s23  ;;  %p1223_p4 = scmp.lt.u32.totalorder %s1215_s23, %s1593_s15 }
 0x38f   : > { %p1217_p2 = pnand %p1216_p9, %p1410_p12 }
 0x390   : > { %p1222_p1 = por %p1221_p11, %p1220_p5 }
 0x391   : > { %p1218_p0 = pneg %p1217_p2 }
 0x392   : > { %p1224_p6 = por %p1223_p4, %p1222_p1 }
 0x394   : > { %p1225_p8 = pnand %p1224_p6, %p1218_p0 }
 0x396   : > { %1228 = shalt.err (!%p1225_p8)
}
 0x397   : > { %1072 = dma.vmem_to_hbm [thread:$0]  (%p1410_p12), %s1595_s14, 256, %s1593_s15, %s943_s22  }
 0x398 PF: > { %s969_s24 = sand.u32 1, %s1259_s18   ;;  %p1657_p10 = scmp.ne.s32.totalorder %s1647_s25, 0 }
 0x399   : > { %p1658_p13 = scmp.ge.s32.totalorder %s1271_s21, 2  ;;  %s970_s26 = scalar_lea.sflag [#allocation4], %s969_s24 }
 0x39b   : > { %p1083_p3 = pnand %p1658_p13, %p1657_p10 }
 0x39d   : > { %1254 = dma.done.wait (!%p1083_p3), %s970_s26, 256  }
 0x39e   : > { %1256 = vsyncadd (!%p1083_p3), %s970_s26, 4294967040  ;;  %p19_p7 = scmp.ge.s32.totalorder %s1375_s30, 4   ;;  %s1659_s18 = smov %s1263_s19 }
 0x39f   : > { %s1660_s19 = smov %s1267_s20  ;;  %s1661_s20 = smov %s1406_s8 }
 0x3a0   : > { %s1662_s21 = smov %s1375_s30  ;;  %21 = sbr.rel (!%p19_p7) target bundleno = 6 (0x6), region = 97 }
 0x3a7   :  { %975 = vsyncpa [#allocation3], 1 }
 0x3a8   :  { %977 = vsyncpa [#allocation3 + $0x1], 1 }
 0x3a9   :  { %978 = vsyncpa [#allocation6], 1 }
 0x3aa   :  { %979 = vsyncpa [#allocation4], 1 }
 0x3ab   :  { %981 = vsyncpa [#allocation4 + $0x1], 1 }

</bundles_post_ra>
